<compile_context>
chip_gen: v5e
topology: v5e:2x2
jax: 0.10.0
libtpu: 0.0.40
codegen_flags: <defaults>
</compile_context>

<pallas_src>
import functools

import jax
import jax.numpy as jnp
from jax import lax
from jax.experimental import pallas as pl
from jax.experimental.pallas import tpu as pltpu

# Logical MLP dims from the PyTorch module: 7 -> 100 -> 100 -> 50 -> 1
D_IN, D_H1, D_H2, D_H3, D_OUT = 7, 100, 100, 50, 1
# Lane-dense (multiple-of-128) padded hidden widths. Zero padding is exact:
# padded columns get 0 pre-activation + 0 bias, stay 0 through ReLU, and the
# corresponding (zero) weight rows downstream contribute nothing.
P_H1, P_H2, P_H3 = 128, 128, 128
# In-kernel batch sub-chunk (keeps each live (SUB, 128) f32 intermediate at 16
# vregs so nothing spills, even on v5e's single store slot).
SUB = 128


def _round_up(n, m):
    return ((n + m - 1) // m) * m


def mlp_kernel(x_ref, w1_ref, b1_ref, w2_ref, b2_ref, w3_ref, b3_ref,
               w4_ref, b4_ref, o_ref):
    """Fused forward pass for one (bm, 7) batch tile.

    Loops over SUB-row sub-chunks of the tile so the DMA tile stays large
    (grid-overhead amortization) while the hot loop fits the 64-vreg file.
    """
    nsub = x_ref.shape[0] // SUB
    b4 = b4_ref[0]  # scalar bias of the final layer (SMEM)

    def body(j, carry):
        r = pl.multiple_of(j * SUB, SUB)
        xb = x_ref[pl.ds(r, SUB), :]                                    # (SUB, 7)
        h = jnp.maximum(
            jnp.dot(xb, w1_ref[...], preferred_element_type=jnp.float32)
            + b1_ref[...], 0.0)                                         # (SUB, 128)
        h = jnp.maximum(
            jnp.dot(h, w2_ref[...], preferred_element_type=jnp.float32)
            + b2_ref[...], 0.0)                                         # (SUB, 128)
        h = jnp.maximum(
            jnp.dot(h, w3_ref[...], preferred_element_type=jnp.float32)
            + b3_ref[...], 0.0)                                         # (SUB, 128)
        # Final (SUB,50)@(50,1) layer on VPU/XLU instead of a near-empty MXU
        # pass: elementwise multiply by the w4 row and reduce over lanes.
        y = jnp.sum(h * w4_ref[...], axis=-1) + b4                      # (SUB,)
        # Lane-dense store: one full 128-lane row of the output block.
        o_ref[0, pl.ds(j, 1), :] = y.reshape(1, SUB).astype(o_ref.dtype)
        return carry

    lax.fori_loop(0, nsub, body, 0, unroll=True)


@functools.partial(jax.jit, static_argnames=("bm",))
def _forward_impl(x, params, *, bm):
    w1, b1, w2, b2, w3, b3, w4, b4 = params
    B = x.shape[0]
    B_pad = _round_up(B, bm)
    if B_pad != B:
        x = jnp.pad(x, ((0, B_pad - B), (0, 0)))

    # Zero-pad weights/biases to lane-dense widths (tiny, one-time-ish ops).
    w1p = jnp.pad(w1, ((0, 0), (0, P_H1 - D_H1)))
    b1p = jnp.pad(b1, ((0, 0), (0, P_H1 - D_H1)))
    w2p = jnp.pad(w2, ((0, P_H1 - D_H1), (0, P_H2 - D_H2)))
    b2p = jnp.pad(b2, ((0, 0), (0, P_H2 - D_H2)))
    w3p = jnp.pad(w3, ((0, P_H2 - D_H2), (0, P_H3 - D_H3)))
    b3p = jnp.pad(b3, ((0, 0), (0, P_H3 - D_H3)))
    w4row = jnp.pad(w4.T, ((0, 0), (0, P_H3 - D_H3)))   # (1, P_H3)
    b4s = b4.reshape(1)                                 # scalar, via SMEM

    G = B_pad // bm
    nsub = bm // SUB

    def full(shape):
        return pl.BlockSpec(shape, lambda i: (0,) * len(shape))

    out3d = pl.pallas_call(
        mlp_kernel,
        out_shape=jax.ShapeDtypeStruct((G, nsub, SUB), jnp.float32),
        grid_spec=pltpu.PrefetchScalarGridSpec(
            num_scalar_prefetch=0,
            grid=(G,),
            in_specs=[
                pl.BlockSpec((bm, D_IN), lambda i: (i, 0)),   # x tile (7-wide, unpadded)
                full((D_IN, P_H1)), full((1, P_H1)),          # hidden1 (resident)
                full((P_H1, P_H2)), full((1, P_H2)),          # hidden2 (resident)
                full((P_H2, P_H3)), full((1, P_H3)),          # hidden3 (resident)
                full((1, P_H3)),                              # predict weight row
                pl.BlockSpec(memory_space=pltpu.MemorySpace.SMEM),  # predict bias
            ],
            out_specs=pl.BlockSpec((1, nsub, SUB), lambda i: (i, 0, 0)),
        ),
        compiler_params=pltpu.CompilerParams(
            dimension_semantics=("parallel",)),
    )(x, w1p, b1p, w2p, b2p, w3p, b3p, w4row, b4s)

    # Matches `return y[:, 0]` in the PyTorch module.
    return out3d.reshape(B_pad)[:B]


def mlp_regression_forward(x, params, *, bm=512):
    """Pallas forward for MlpRegression. x: (B, 7) float32 -> (B,) float32."""
    B = x.shape[0]
    # Clamp the batch tile for small batches (avoid computing a huge padded
    # tile) while keeping it a multiple of the in-kernel sub-chunk SUB.
    # For large B, bm=512 gives >=2 grid steps whenever B >= 1024, keeping both
    # v7x TensorCores busy via the "parallel" grid axis.
    bm_eff = max(SUB, min(_round_up(bm, SUB), _round_up(B, SUB)))
    return _forward_impl(x, params, bm=bm_eff)


def init_params(key):
    """Deterministic init mimicking nn.Linear's U(-1/sqrt(fan_in), 1/sqrt(fan_in))."""
    dims = [(D_IN, D_H1), (D_H1, D_H2), (D_H2, D_H3), (D_H3, D_OUT)]
    params = []
    keys = jax.random.split(key, 2 * len(dims))
    for idx, (fan_in, fan_out) in enumerate(dims):
        bound = 1.0 / jnp.sqrt(float(fan_in))
        w = jax.random.uniform(keys[2 * idx], (fan_in, fan_out),
                               minval=-bound, maxval=bound, dtype=jnp.float32)
        b = jax.random.uniform(keys[2 * idx + 1], (1, fan_out),
                               minval=-bound, maxval=bound, dtype=jnp.float32)
        params += [w, b]
    return tuple(params)


def reference_forward(x, params):
    w1, b1, w2, b2, w3, b3, w4, b4 = params
    h = jax.nn.relu(x @ w1 + b1)
    h = jax.nn.relu(h @ w2 + b2)
    h = jax.nn.relu(h @ w3 + b3)
    y = h @ w4 + b4
    return y[:, 0]


# TODO(synk): the module's train()/test() loops (MSELoss, optimizer stepping)
# are host-side training utilities, not part of the forward kernel.

if __name__ == "__main__":
    key = jax.random.PRNGKey(0)
    k_params, k_x = jax.random.split(key)
    params = init_params(k_params)

    B = 10  # small, deliberately non-multiple of the tile to exercise padding
    x = jax.random.normal(k_x, (B, D_IN), dtype=jnp.float32)

    y = mlp_regression_forward(x, params)
    y = jax.block_until_ready(y)

    y_ref = reference_forward(x, params)
    assert y.shape == (B,)
    assert jnp.allclose(y, y_ref, atol=1e-5, rtol=1e-4), "mismatch vs reference"

    print("KERNEL_OK")
</pallas_src>

<mosaic_0001>
module attributes {stable_mosaic.version = 11 : i64} {
  func.func @mlp_kernel(%arg0: i32, %arg1: memref<128x7xf32, #tpu.memory_space<vmem>>, %arg2: memref<7x128xf32, #tpu.memory_space<vmem>>, %arg3: memref<1x128xf32, #tpu.memory_space<vmem>>, %arg4: memref<128x128xf32, #tpu.memory_space<vmem>>, %arg5: memref<1x128xf32, #tpu.memory_space<vmem>>, %arg6: memref<128x128xf32, #tpu.memory_space<vmem>>, %arg7: memref<1x128xf32, #tpu.memory_space<vmem>>, %arg8: memref<1x128xf32, #tpu.memory_space<vmem>>, %arg9: memref<1xf32, #tpu.memory_space<smem>>, %arg10: memref<1x1x128xf32, #tpu.memory_space<vmem>>) attributes {dimension_semantics = [#tpu.dimension_semantics<parallel>], iteration_bounds = array<i64: 1>, scalar_prefetch = 0 : i64, scratch_operands = 0 : i64, tpu.core_type = #tpu.core_type<tc>, window_params = [{transform_indices = @transform_0, window_bounds = array<i64: 128, 7>}, {pipeline_mode = #tpu.pipeline_mode<synchronous>, transform_indices = @transform_1, window_bounds = array<i64: 7, 128>}, {pipeline_mode = #tpu.pipeline_mode<synchronous>, transform_indices = @transform_2, window_bounds = array<i64: 1, 128>}, {pipeline_mode = #tpu.pipeline_mode<synchronous>, transform_indices = @transform_3, window_bounds = array<i64: 128, 128>}, {pipeline_mode = #tpu.pipeline_mode<synchronous>, transform_indices = @transform_4, window_bounds = array<i64: 1, 128>}, {pipeline_mode = #tpu.pipeline_mode<synchronous>, transform_indices = @transform_5, window_bounds = array<i64: 128, 128>}, {pipeline_mode = #tpu.pipeline_mode<synchronous>, transform_indices = @transform_6, window_bounds = array<i64: 1, 128>}, {pipeline_mode = #tpu.pipeline_mode<synchronous>, transform_indices = @transform_7, window_bounds = array<i64: 1, 128>}, {transform_indices = @transform_8, window_bounds = array<i64: 1>}, {transform_indices = @transform_9, window_bounds = array<i64: 1, 1, 128>}]} {
    %c0 = arith.constant 0 : index
    %0 = memref.load %arg9[%c0] : memref<1xf32, #tpu.memory_space<smem>>
    %c0_i32 = arith.constant 0 : i32
    %c128_i32 = arith.constant 128 : i32
    %1 = arith.muli %c0_i32, %c128_i32 : i32
    %2 = tpu.assume_multiple %1, 128 : i32
    %3 = arith.index_cast %2 : i32 to index
    %c0_0 = arith.constant 0 : index
    %4 = vector.load %arg1[%3, %c0_0] : memref<128x7xf32, #tpu.memory_space<vmem>>, vector<128x7xf32>
    %c0_1 = arith.constant 0 : index
    %c0_2 = arith.constant 0 : index
    %5 = vector.load %arg2[%c0_1, %c0_2] : memref<7x128xf32, #tpu.memory_space<vmem>>, vector<7x128xf32>
    %cst = arith.constant dense<0.000000e+00> : vector<128x128xf32>
    %6 = tpu.matmul %4, %5, %cst {dimension_numbers = #tpu.dot_dimension_numbers<[1], [0], [0], [1], [0, 0, 1, 1], [], []>} : vector<128x7xf32>, vector<7x128xf32>, vector<128x128xf32> -> vector<128x128xf32>
    %c0_3 = arith.constant 0 : index
    %c0_4 = arith.constant 0 : index
    %7 = vector.load %arg3[%c0_3, %c0_4] : memref<1x128xf32, #tpu.memory_space<vmem>>, vector<1x128xf32>
    %8 = vector.broadcast %7 : vector<1x128xf32> to vector<128x128xf32>
    %9 = arith.addf %6, %8 : vector<128x128xf32>
    %cst_5 = arith.constant 0.000000e+00 : f32
    %10 = vector.broadcast %cst_5 : f32 to vector<128x128xf32>
    %11 = arith.maximumf %9, %10 : vector<128x128xf32>
    %c0_6 = arith.constant 0 : index
    %c0_7 = arith.constant 0 : index
    %12 = vector.load %arg4[%c0_6, %c0_7] : memref<128x128xf32, #tpu.memory_space<vmem>>, vector<128x128xf32>
    %cst_8 = arith.constant dense<0.000000e+00> : vector<128x128xf32>
    %13 = tpu.matmul %11, %12, %cst_8 {dimension_numbers = #tpu.dot_dimension_numbers<[1], [0], [0], [1], [0, 0, 1, 1], [], []>} : vector<128x128xf32>, vector<128x128xf32>, vector<128x128xf32> -> vector<128x128xf32>
    %c0_9 = arith.constant 0 : index
    %c0_10 = arith.constant 0 : index
    %14 = vector.load %arg5[%c0_9, %c0_10] : memref<1x128xf32, #tpu.memory_space<vmem>>, vector<1x128xf32>
    %15 = vector.broadcast %14 : vector<1x128xf32> to vector<128x128xf32>
    %16 = arith.addf %13, %15 : vector<128x128xf32>
    %cst_11 = arith.constant 0.000000e+00 : f32
    %17 = vector.broadcast %cst_11 : f32 to vector<128x128xf32>
    %18 = arith.maximumf %16, %17 : vector<128x128xf32>
    %c0_12 = arith.constant 0 : index
    %c0_13 = arith.constant 0 : index
    %19 = vector.load %arg6[%c0_12, %c0_13] : memref<128x128xf32, #tpu.memory_space<vmem>>, vector<128x128xf32>
    %cst_14 = arith.constant dense<0.000000e+00> : vector<128x128xf32>
    %20 = tpu.matmul %18, %19, %cst_14 {dimension_numbers = #tpu.dot_dimension_numbers<[1], [0], [0], [1], [0, 0, 1, 1], [], []>} : vector<128x128xf32>, vector<128x128xf32>, vector<128x128xf32> -> vector<128x128xf32>
    %c0_15 = arith.constant 0 : index
    %c0_16 = arith.constant 0 : index
    %21 = vector.load %arg7[%c0_15, %c0_16] : memref<1x128xf32, #tpu.memory_space<vmem>>, vector<1x128xf32>
    %22 = vector.broadcast %21 : vector<1x128xf32> to vector<128x128xf32>
    %23 = arith.addf %20, %22 : vector<128x128xf32>
    %cst_17 = arith.constant 0.000000e+00 : f32
    %24 = vector.broadcast %cst_17 : f32 to vector<128x128xf32>
    %25 = arith.maximumf %23, %24 : vector<128x128xf32>
    %c0_18 = arith.constant 0 : index
    %c0_19 = arith.constant 0 : index
    %26 = vector.load %arg8[%c0_18, %c0_19] : memref<1x128xf32, #tpu.memory_space<vmem>>, vector<1x128xf32>
    %27 = vector.broadcast %26 : vector<1x128xf32> to vector<128x128xf32>
    %28 = arith.mulf %25, %27 : vector<128x128xf32>
    %cst_20 = arith.constant dense<0.000000e+00> : vector<128xf32>
    %29 = vector.multi_reduction <add>, %28, %cst_20 [1] : vector<128x128xf32> to vector<128xf32>
    %30 = vector.broadcast %0 : f32 to vector<128xf32>
    %31 = arith.addf %29, %30 : vector<128xf32>
    %32 = vector.shape_cast %31 : vector<128xf32> to vector<1x128xf32>
    %c0_21 = arith.constant 0 : index
    %33 = arith.index_cast %c0_i32 : i32 to index
    %c0_22 = arith.constant 0 : index
    %34 = vector.load %arg10[%c0_21, %33, %c0_22] : memref<1x1x128xf32, #tpu.memory_space<vmem>>, vector<1x1x128xf32>
    %35 = vector.shape_cast %34 : vector<1x1x128xf32> to vector<1x128xf32>
    %36 = vector.shape_cast %32 : vector<1x128xf32> to vector<1x1x128xf32>
    tpu.vector_store %arg10[%c0_21, %33, %c0_22], %36 {strides = array<i32>} : memref<1x1x128xf32, #tpu.memory_space<vmem>>, vector<1x1x128xf32>,
    %c1_i32 = arith.constant 1 : i32
    return
  }
  func.func @transform_0(%arg0: i32) -> (i32, i32) {
    %c0_i32 = arith.constant 0 : i32
    %c0_i32_0 = arith.constant 0 : i32
    return %arg0, %c0_i32 : i32, i32
  }
  func.func @transform_1(%arg0: i32) -> (i32, i32) {
    %c0_i32 = arith.constant 0 : i32
    %c0_i32_0 = arith.constant 0 : i32
    %c0_i32_1 = arith.constant 0 : i32
    return %c0_i32, %c0_i32_0 : i32, i32
  }
  func.func @transform_2(%arg0: i32) -> (i32, i32) {
    %c0_i32 = arith.constant 0 : i32
    %c0_i32_0 = arith.constant 0 : i32
    %c0_i32_1 = arith.constant 0 : i32
    return %c0_i32, %c0_i32_0 : i32, i32
  }
  func.func @transform_3(%arg0: i32) -> (i32, i32) {
    %c0_i32 = arith.constant 0 : i32
    %c0_i32_0 = arith.constant 0 : i32
    %c0_i32_1 = arith.constant 0 : i32
    return %c0_i32, %c0_i32_0 : i32, i32
  }
  func.func @transform_4(%arg0: i32) -> (i32, i32) {
    %c0_i32 = arith.constant 0 : i32
    %c0_i32_0 = arith.constant 0 : i32
    %c0_i32_1 = arith.constant 0 : i32
    return %c0_i32, %c0_i32_0 : i32, i32
  }
  func.func @transform_5(%arg0: i32) -> (i32, i32) {
    %c0_i32 = arith.constant 0 : i32
    %c0_i32_0 = arith.constant 0 : i32
    %c0_i32_1 = arith.constant 0 : i32
    return %c0_i32, %c0_i32_0 : i32, i32
  }
  func.func @transform_6(%arg0: i32) -> (i32, i32) {
    %c0_i32 = arith.constant 0 : i32
    %c0_i32_0 = arith.constant 0 : i32
    %c0_i32_1 = arith.constant 0 : i32
    return %c0_i32, %c0_i32_0 : i32, i32
  }
  func.func @transform_7(%arg0: i32) -> (i32, i32) {
    %c0_i32 = arith.constant 0 : i32
    %c0_i32_0 = arith.constant 0 : i32
    %c0_i32_1 = arith.constant 0 : i32
    return %c0_i32, %c0_i32_0 : i32, i32
  }
  func.func @transform_8(%arg0: i32) -> i32 {
    %c0_i32 = arith.constant 0 : i32
    %c0_i32_0 = arith.constant 0 : i32
    return %c0_i32 : i32
  }
  func.func @transform_9(%arg0: i32) -> (i32, i32, i32) {
    %c0_i32 = arith.constant 0 : i32
    %c0_i32_0 = arith.constant 0 : i32
    %c0_i32_1 = arith.constant 0 : i32
    return %arg0, %c0_i32, %c0_i32_0 : i32, i32, i32
  }
}

</mosaic_0001>

<bundles_post_ra>
// kernel: _forward_impl.1
= control target key start
LH: loop header
LB: loop body
LE: loop exit
PB: predicated region body
PF: predicated region fallthrough
CT: control target
= control target key end

     0   :  { %vm104_vm0 = vcmask 1046528   ;;  %vm55_vm1 = vcmask 56320   ;;  %vm481_vm2 = vcmask 130112   ;;  %vm485_vm3 = vcmask 195712   ;;  %s944_s1 = inlined_call_operand.vmem [shape: f32[7,128], index: 1, kind: input, shape index: {}]   ;;  %s945_s0 = inlined_call_operand.vmem [shape: f32[128,7], index: 0, kind: input, shape index: {}]   ;;  %s946_s2 = inlined_call_operand.vmem [shape: f32[1,128], index: 2, kind: input, shape index: {}]   ;;  %s947_s3 = inlined_call_operand.vmem [shape: f32[128,128], index: 3, kind: input, shape index: {}]   ;;  %s948_s4 = inlined_call_operand.vmem [shape: f32[1,128], index: 4, kind: input, shape index: {}]   ;;  %s949_s5 = inlined_call_operand.vmem [shape: f32[128,128], index: 5, kind: input, shape index: {}]   ;;  %s950_s6 = inlined_call_operand.vmem [shape: f32[1,128], index: 6, kind: input, shape index: {}]   ;;  %s951_s7 = inlined_call_operand.vmem [shape: f32[1,128], index: 7, kind: input, shape index: {}]   ;;  %s952_s8 = inlined_call_operand.<no memory space> [shape: f32[1], index: 8, kind: input, shape index: {}]   ;;  %s953_s9 = inlined_call_operand.vmem [shape: f32[1,1,128], index: 9, kind: output, shape index: {}]  }
   0x1   :  { %v50_v0 = vld [vmem:[%s944_s1] sm:$0x7f]  ;;  %v35_v2 = vld [vmem:[%s945_s0 + $0x8] sm:$0xff]  ;;  %v36_v3 = vld [vmem:[%s945_s0 + $0x10] sm:$0xff]  ;;  %vm489_vm4 = vcmask 261312   ;;  %vm493_vm5 = vcmask 326912  }
   0x2   :  { %v34_v1 = vld [vmem:[%s945_s0] sm:$0xff]  ;;  %545 = vmatpush.msk.msra.mxu0 %vm104_vm0, %v50_v0  ;;  %v37_v4 = vld [vmem:[%s945_s0 + $0x18] sm:$0xff]  ;;  %v39_v6 = vld [vmem:[%s945_s0 + $0x28] sm:$0xff]  ;;  %vm497_vm6 = vcmask 392512   ;;  %vm501_vm7 = vcmask 458112   ;;  %vm505_vm8 = vcmask 523712  }
   0x3   :  { %546 = vmatmul.msk.f32.vlgmr.msra.gmra.mxu0 %vm55_vm1, %v34_v1  ;;  %v38_v5 = vld [vmem:[%s945_s0 + $0x20] sm:$0xff]  ;;  %v40_v7 = vld [vmem:[%s945_s0 + $0x30] sm:$0xff]  ;;  %v41_v8 = vld [vmem:[%s945_s0 + $0x38] sm:$0xff]  ;;  %vm509_vm9 = vcmask 589312   ;;  %vm513_vm10 = vcmask 654912   ;;  %vm517_vm11 = vcmask 720512  }
   0x4   :  { %v42_v9 = vld [vmem:[%s945_s0 + $0x40] sm:$0xff]  ;;  %v204_v10 = vld [vmem:[%s947_s3 + $0x78] sm:$0xff]  ;;  %v203_v11 = vld [vmem:[%s947_s3 + $0x70] sm:$0xff]  ;;  %vm521_vm12 = vcmask 786112   ;;  %vm525_vm13 = vcmask 851712   ;;  %vm529_vm14 = vcmask 917312  }
   0x5   :  { %209 = vmatpush.msra.mxu1 %v204_v10  ;;  %562 = vmatpush.msra.mxu3 %v204_v10  ;;  %v202_v12 = vld [vmem:[%s947_s3 + $0x68] sm:$0xff]  ;;  %v201_v14 = vld [vmem:[%s947_s3 + $0x60] sm:$0xff]  ;;  %v200_v15 = vld [vmem:[%s947_s3 + $0x58] sm:$0xff]  ;;  %vm533_vm15 = vcmask 982912   ;;  %vm537_vm0 = vcmask 1048512  }
   0x6   :  { %v43_v13 = vld [vmem:[%s945_s0 + $0x48] sm:$0xff]  ;;  %v199_v16 = vld [vmem:[%s947_s3 + $0x50] sm:$0xff]  ;;  %v197_v19 = vld [vmem:[%s947_s3 + $0x40] sm:$0xff] }
   0x7   :  { %210 = vmatpush.msra.mxu1 %v203_v11  ;;  %563 = vmatpush.msra.mxu3 %v203_v11  ;;  %v198_v17 = vld [vmem:[%s947_s3 + $0x48] sm:$0xff]  ;;  %v44_v18 = vld [vmem:[%s945_s0 + $0x50] sm:$0xff]  ;;  %v196_v20 = vld [vmem:[%s947_s3 + $0x38] sm:$0xff] }
   0x8   :  { %v195_v21 = vld [vmem:[%s947_s3 + $0x30] sm:$0xff]  ;;  %v194_v22 = vld [vmem:[%s947_s3 + $0x28] sm:$0xff]  ;;  %v45_v23 = vld [vmem:[%s945_s0 + $0x58] sm:$0xff] }
   0x9   :  { %211 = vmatpush.msra.mxu1 %v202_v12  ;;  %564 = vmatpush.msra.mxu3 %v202_v12  ;;  %v193_v24 = vld [vmem:[%s947_s3 + $0x20] sm:$0xff]  ;;  %v192_v25 = vld [vmem:[%s947_s3 + $0x18] sm:$0xff]  ;;  %v191_v26 = vld [vmem:[%s947_s3 + $0x10] sm:$0xff] }
   0xa   :  { %v46_v27 = vld [vmem:[%s945_s0 + $0x60] sm:$0xff]  ;;  %v190_v28 = vld [vmem:[%s947_s3 + $0x8] sm:$0xff]  ;;  %v48_v31 = vld [vmem:[%s945_s0 + $0x70] sm:$0xff] }
   0xb   :  { %547 = vmatmul.msk.f32.gmra.mxu0 %vm55_vm1, %v35_v2  ;;  %212 = vmatpush.msra.mxu1 %v201_v14  ;;  %v189_v29 = vld [vmem:[%s947_s3] sm:$0xff]  ;;  %v47_v30 = vld [vmem:[%s945_s0 + $0x68] sm:$0xff]  ;;  %v49_v32 = vld [vmem:[%s945_s0 + $0x78] sm:$0xff] }
   0xc   :  { %565 = vmatpush.msra.mxu3 %v201_v14  ;;  %v766_v33 = vld [vmem:[%s946_s2] ss:$0 sm:$0xff]  ;;  %v305_v61 = vld [vmem:[%s949_s5 + $0x78] sm:$0xff]  ;;  %v304_v0 = vld [vmem:[%s949_s5 + $0x70] sm:$0xff] }
   0xd   :  { %213 = vmatpush.msra.mxu1 %v200_v15  ;;  %310 = vmatpush.msra.mxu2 %v305_v61  ;;  %v303_v2 = vld [vmem:[%s949_s5 + $0x68] sm:$0xff]  ;;  %v298_v10 = vld [vmem:[%s949_s5 + $0x40] sm:$0xff]  ;;  %v297_v11 = vld [vmem:[%s949_s5 + $0x38] sm:$0xff] }
   0xe   :  { %566 = vmatpush.msra.mxu3 %v200_v15  ;;  %v296_v14 = vld [vmem:[%s949_s5 + $0x30] sm:$0xff] }
   0xf   :  { %214 = vmatpush.msra.mxu1 %v199_v16  ;;  %311 = vmatpush.msra.mxu2 %v304_v0 }
  0x10   :  { %567 = vmatpush.msra.mxu3 %v199_v16  ;;  %v295_v16 = vld [vmem:[%s949_s5 + $0x28] sm:$0xff] }
  0x11   :  { %215 = vmatpush.msra.mxu1 %v198_v17  ;;  %312 = vmatpush.msra.mxu2 %v303_v2 }
  0x12   :  { %568 = vmatpush.msra.mxu3 %v198_v17  ;;  %v294_v17 = vld [vmem:[%s949_s5 + $0x20] sm:$0xff] }
  0x13   :  { %548 = vmatmul.msk.f32.gmra.mxu0 %vm55_vm1, %v36_v3  ;;  %216 = vmatpush.msra.mxu1 %v197_v19  ;;  %v302_v3 = vld [vmem:[%s949_s5 + $0x60] sm:$0xff] }
  0x14   :  { %569 = vmatpush.msra.mxu3 %v197_v19  ;;  %313 = vmatpush.msra.mxu2 %v302_v3 }
  0x15   :  { %217 = vmatpush.msra.mxu1 %v196_v20 }
  0x16   :  { %570 = vmatpush.msra.mxu3 %v196_v20 }
  0x17   :  { %218 = vmatpush.msra.mxu1 %v195_v21 }
  0x18   :  { %571 = vmatpush.msra.mxu3 %v195_v21  ;;  %v292_v21 = vld [vmem:[%s949_s5 + $0x10] sm:$0xff] }
  0x19   :  { %219 = vmatpush.msra.mxu1 %v194_v22 }
  0x1a   :  { %572 = vmatpush.msra.mxu3 %v194_v22 }
  0x1b   :  { %549 = vmatmul.msk.f32.gmra.mxu0 %vm55_vm1, %v37_v4  ;;  %220 = vmatpush.msra.mxu1 %v193_v24  ;;  %v301_v4 = vld [vmem:[%s949_s5 + $0x58] sm:$0xff] }
  0x1c   :  { %573 = vmatpush.msra.mxu3 %v193_v24  ;;  %314 = vmatpush.msra.mxu2 %v301_v4  ;;  %v290_v24 = vld [vmem:[%s949_s5] sm:$0xff] }
  0x1d   :  { %221 = vmatpush.msra.mxu1 %v192_v25 }
  0x1e   :  { %574 = vmatpush.msra.mxu3 %v192_v25 }
  0x1f   :  { %222 = vmatpush.msra.mxu1 %v191_v26 }
  0x20   :  { %575 = vmatpush.msra.mxu3 %v191_v26 }
  0x21   :  { %223 = vmatpush.msra.mxu1 %v190_v28 }
  0x22   :  { %576 = vmatpush.msra.mxu3 %v190_v28 }
  0x23   :  { %550 = vmatmul.msk.f32.gmra.mxu0 %vm55_vm1, %v38_v5  ;;  %224 = vmatpush.msra.mxu1 %v189_v29 }
  0x24   :  { %577 = vmatpush.msra.mxu3 %v189_v29 }
  0x26   :  { %578 = vmatpush.msrb.mxu3 %v305_v61 }
  0x28   :  { %579 = vmatpush.msrb.mxu3 %v304_v0 }
  0x2a   :  { %580 = vmatpush.msrb.mxu3 %v303_v2 }
  0x2b   :  { %551 = vmatmul.msk.f32.gmra.mxu0 %vm55_vm1, %v39_v6 }
  0x2c   :  { %581 = vmatpush.msrb.mxu3 %v302_v3 }
  0x2e   :  { %582 = vmatpush.msrb.mxu3 %v301_v4 }
  0x33   :  { %552 = vmatmul.msk.f32.gmra.mxu0 %vm55_vm1, %v40_v7  ;;  %v300_v7 = vld [vmem:[%s949_s5 + $0x50] sm:$0xff] }
  0x34   :  { %315 = vmatpush.msra.mxu2 %v300_v7  ;;  %583 = vmatpush.msrb.mxu3 %v300_v7 }
  0x3b   :  { %553 = vmatmul.msk.f32.gmra.mxu0 %vm55_vm1, %v41_v8 }
  0x43   :  { %554 = vmatmul.msk.f32.gmra.mxu0 %vm55_vm1, %v42_v9  ;;  %v299_v9 = vld [vmem:[%s949_s5 + $0x48] sm:$0xff] }
  0x44   :  { %316 = vmatpush.msra.mxu2 %v299_v9  ;;  %584 = vmatpush.msrb.mxu3 %v299_v9 }
  0x46   :  { %317 = vmatpush.msra.mxu2 %v298_v10  ;;  %585 = vmatpush.msrb.mxu3 %v298_v10 }
  0x48   :  { %318 = vmatpush.msra.mxu2 %v297_v11  ;;  %586 = vmatpush.msrb.mxu3 %v297_v11 }
  0x4a   :  { %319 = vmatpush.msra.mxu2 %v296_v14  ;;  %587 = vmatpush.msrb.mxu3 %v296_v14 }
  0x4b   :  { %555 = vmatmul.msk.f32.gmra.mxu0 %vm55_vm1, %v43_v13 }
  0x4c   :  { %320 = vmatpush.msra.mxu2 %v295_v16  ;;  %588 = vmatpush.msrb.mxu3 %v295_v16 }
  0x4e   :  { %321 = vmatpush.msra.mxu2 %v294_v17  ;;  %589 = vmatpush.msrb.mxu3 %v294_v17 }
  0x53   :  { %556 = vmatmul.msk.f32.gmra.mxu0 %vm55_vm1, %v44_v18  ;;  %v293_v18 = vld [vmem:[%s949_s5 + $0x18] sm:$0xff] }
  0x54   :  { %322 = vmatpush.msra.mxu2 %v293_v18  ;;  %590 = vmatpush.msrb.mxu3 %v293_v18 }
  0x56   :  { %323 = vmatpush.msra.mxu2 %v292_v21  ;;  %591 = vmatpush.msrb.mxu3 %v292_v21 }
  0x5b   :  { %557 = vmatmul.msk.f32.gmra.mxu0 %vm55_vm1, %v45_v23  ;;  %v291_v23 = vld [vmem:[%s949_s5 + $0x8] sm:$0xff] }
  0x5c   :  { %324 = vmatpush.msra.mxu2 %v291_v23  ;;  %592 = vmatpush.msrb.mxu3 %v291_v23 }
  0x5e   :  { %325 = vmatpush.msra.mxu2 %v290_v24  ;;  %593 = vmatpush.msrb.mxu3 %v290_v24 }
  0x63   :  { %558 = vmatmul.msk.f32.gmra.mxu0 %vm55_vm1, %v46_v27 }
  0x6b   :  { %559 = vmatmul.msk.f32.gmra.mxu0 %vm55_vm1, %v47_v30 }
  0x73   :  { %560 = vmatmul.msk.f32.gmra.mxu0 %vm55_vm1, %v48_v31 }
  0x7b   :  { %561 = vmatmul.msk.f32.gmra.mxu0 %vm55_vm1, %v49_v32 }
  0x80   :  { %v125_v34 = vpop.f32.mrf.mxu0 }
  0x81   :  { %v126_v35 = vadd.f32 %v766_v33, %v125_v34 }
  0x83   :  { %v173_v36 = vmax.f32 %v126_v35, 0.0  ;;  %v835_v35 = vld [vmem:[%s948_s4] ss:$0 sm:$0xff] }
  0x85   :  { %225 = vmatmul.f32.vlgmr.msra.gmra.mxu1 %v173_v36 }
  0x88   :  { %v128_v37 = vpop.f32.mrf.mxu0 }
  0x89   :  { %v129_v38 = vadd.f32 %v766_v33, %v128_v37 }
  0x8b   :  { %v174_v39 = vmax.f32 %v129_v38, 0.0 }
  0x8d   :  { %228 = vmatmul.f32.gmra.mxu1 %v174_v39 }
  0x90   :  { %v131_v40 = vpop.f32.mrf.mxu0 }
  0x91   :  { %v132_v41 = vadd.f32 %v766_v33, %v131_v40 }
  0x93   :  { %v175_v42 = vmax.f32 %v132_v41, 0.0 }
  0x95   :  { %231 = vmatmul.f32.gmra.mxu1 %v175_v42 }
  0x98   :  { %v134_v43 = vpop.f32.mrf.mxu0 }
  0x99   :  { %v135_v44 = vadd.f32 %v766_v33, %v134_v43 }
  0x9b   :  { %v176_v45 = vmax.f32 %v135_v44, 0.0 }
  0x9d   :  { %234 = vmatmul.f32.gmra.mxu1 %v176_v45 }
  0xa0   :  { %v137_v46 = vpop.f32.mrf.mxu0 }
  0xa1   :  { %v138_v47 = vadd.f32 %v766_v33, %v137_v46 }
  0xa3   :  { %v177_v48 = vmax.f32 %v138_v47, 0.0 }
  0xa5   :  { %237 = vmatmul.f32.gmra.mxu1 %v177_v48 }
  0xa8   :  { %v140_v49 = vpop.f32.mrf.mxu0 }
  0xa9   :  { %v141_v50 = vadd.f32 %v766_v33, %v140_v49 }
  0xab   :  { %v178_v51 = vmax.f32 %v141_v50, 0.0 }
  0xad   :  { %240 = vmatmul.f32.gmra.mxu1 %v178_v51 }
  0xb0   :  { %v143_v52 = vpop.f32.mrf.mxu0 }
  0xb1   :  { %v144_v53 = vadd.f32 %v766_v33, %v143_v52 }
  0xb3   :  { %v179_v54 = vmax.f32 %v144_v53, 0.0 }
  0xb5   :  { %243 = vmatmul.f32.gmra.mxu1 %v179_v54 }
  0xb8   :  { %v146_v55 = vpop.f32.mrf.mxu0 }
  0xb9   :  { %v147_v56 = vadd.f32 %v766_v33, %v146_v55 }
  0xbb   :  { %v180_v57 = vmax.f32 %v147_v56, 0.0 }
  0xbd   :  { %246 = vmatmul.f32.gmra.mxu1 %v180_v57 }
  0xc0   :  { %v149_v58 = vpop.f32.mrf.mxu0 }
  0xc1   :  { %v150_v59 = vadd.f32 %v766_v33, %v149_v58 }
  0xc3   :  { %v181_v60 = vmax.f32 %v150_v59, 0.0 }
  0xc5   :  { %249 = vmatmul.f32.gmra.mxu1 %v181_v60 }
  0xc8   :  { %v152_v62 = vpop.f32.mrf.mxu0 }
  0xc9   :  { %v153_v63 = vadd.f32 %v766_v33, %v152_v62 }
  0xcb   :  { %v182_v1 = vmax.f32 %v153_v63, 0.0 }
  0xcd   :  { %252 = vmatmul.f32.gmra.mxu1 %v182_v1 }
  0xd0   :  { %v155_v5 = vpop.f32.mrf.mxu0 }
  0xd1   :  { %v156_v6 = vadd.f32 %v766_v33, %v155_v5 }
  0xd3   :  { %v183_v8 = vmax.f32 %v156_v6, 0.0 }
  0xd5   :  { %255 = vmatmul.f32.gmra.mxu1 %v183_v8 }
  0xd8   :  { %v158_v12 = vpop.f32.mrf.mxu0 }
  0xd9   :  { %v159_v13 = vadd.f32 %v766_v33, %v158_v12 }
  0xdb   :  { %v184_v15 = vmax.f32 %v159_v13, 0.0 }
  0xdd   :  { %258 = vmatmul.f32.vlgmr.msra.gmra.mxu3 %v184_v15 }
  0xe0   :  { %v161_v19 = vpop.f32.mrf.mxu0 }
  0xe1   :  { %v162_v20 = vadd.f32 %v766_v33, %v161_v19  ;;  %v856_v19 = vld [vmem:[%s950_s6] ss:$0 sm:$0xff] }
  0xe3   :  { %v185_v22 = vmax.f32 %v162_v20, 0.0 }
  0xe5   :  { %261 = vmatmul.f32.gmra.mxu3 %v185_v22  ;;  %v862_v22 = vld [vmem:[%s951_s7] ss:$0 sm:$0xff] }
  0xe8   :  { %v164_v25 = vpop.f32.mrf.mxu0 }
  0xe9   :  { %v165_v26 = vadd.f32 %v766_v33, %v164_v25 }
  0xeb   :  { %v186_v27 = vmax.f32 %v165_v26, 0.0 }
  0xed   :  { %264 = vmatmul.f32.gmra.mxu3 %v186_v27 }
  0xf0   :  { %v167_v28 = vpop.f32.mrf.mxu0 }
  0xf1   :  { %v168_v29 = vadd.f32 %v766_v33, %v167_v28 }
  0xf3   :  { %v187_v30 = vmax.f32 %v168_v29, 0.0 }
  0xf5   :  { %267 = vmatmul.f32.gmra.mxu3 %v187_v30 }
  0xf8   :  { %v170_v31 = vpop.f32.mrf.mxu0 }
  0xf9   :  { %v171_v32 = vadd.f32 %v766_v33, %v170_v31 }
  0xfb   :  { %v188_v34 = vmax.f32 %v171_v32, 0.0 }
  0xfd   :  { %270 = vmatmul.f32.gmra.mxu3 %v188_v34 }
 0x102   :  { %v226_v36 = vpop.f32.mrf.mxu1 }
 0x103   :  { %v227_v37 = vadd.f32 %v835_v35, %v226_v36 }
 0x105   :  { %v274_v38 = vmax.f32 %v227_v37, 0.0 }
 0x107   :  { %326 = vmatmul.f32.vlgmr.msra.gmra.mxu2 %v274_v38 }
 0x10a   :  { %v229_v39 = vpop.f32.mrf.mxu1 }
 0x10b   :  { %v230_v40 = vadd.f32 %v835_v35, %v229_v39 }
 0x10d   :  { %v275_v41 = vmax.f32 %v230_v40, 0.0 }
 0x10f   :  { %329 = vmatmul.f32.gmra.mxu2 %v275_v41 }
 0x112   :  { %v232_v42 = vpop.f32.mrf.mxu1 }
 0x113   :  { %v233_v33 = vadd.f32 %v835_v35, %v232_v42 }
 0x115   :  { %v276_v43 = vmax.f32 %v233_v33, 0.0 }
 0x117   :  { %332 = vmatmul.f32.gmra.mxu2 %v276_v43 }
 0x11a   :  { %v235_v44 = vpop.f32.mrf.mxu1 }
 0x11b   :  { %v236_v45 = vadd.f32 %v835_v35, %v235_v44 }
 0x11d   :  { %v277_v46 = vmax.f32 %v236_v45, 0.0 }
 0x11f   :  { %335 = vmatmul.f32.gmra.mxu2 %v277_v46 }
 0x122   :  { %v238_v47 = vpop.f32.mrf.mxu1 }
 0x123   :  { %v239_v48 = vadd.f32 %v835_v35, %v238_v47 }
 0x125   :  { %v278_v49 = vmax.f32 %v239_v48, 0.0 }
 0x127   :  { %338 = vmatmul.f32.gmra.mxu2 %v278_v49 }
 0x12a   :  { %v241_v50 = vpop.f32.mrf.mxu1 }
 0x12b   :  { %v242_v51 = vadd.f32 %v835_v35, %v241_v50 }
 0x12d   :  { %v279_v52 = vmax.f32 %v242_v51, 0.0 }
 0x12f   :  { %341 = vmatmul.f32.gmra.mxu2 %v279_v52 }
 0x132   :  { %v244_v53 = vpop.f32.mrf.mxu1 }
 0x133   :  { %v245_v54 = vadd.f32 %v835_v35, %v244_v53 }
 0x135   :  { %v280_v55 = vmax.f32 %v245_v54, 0.0 }
 0x137   :  { %344 = vmatmul.f32.gmra.mxu2 %v280_v55 }
 0x13a   :  { %v247_v56 = vpop.f32.mrf.mxu1 }
 0x13b   :  { %v248_v57 = vadd.f32 %v835_v35, %v247_v56 }
 0x13d   :  { %v281_v58 = vmax.f32 %v248_v57, 0.0 }
 0x13f   :  { %347 = vmatmul.f32.gmra.mxu2 %v281_v58 }
 0x142   :  { %v250_v59 = vpop.f32.mrf.mxu1 }
 0x143   :  { %v251_v60 = vadd.f32 %v835_v35, %v250_v59 }
 0x145   :  { %v282_v61 = vmax.f32 %v251_v60, 0.0 }
 0x147   :  { %350 = vmatmul.f32.gmra.mxu2 %v282_v61 }
 0x14a   :  { %v253_v62 = vpop.f32.mrf.mxu1 }
 0x14b   :  { %v254_v63 = vadd.f32 %v835_v35, %v253_v62 }
 0x14d   :  { %v283_v0 = vmax.f32 %v254_v63, 0.0 }
 0x14f   :  { %353 = vmatmul.f32.gmra.mxu2 %v283_v0 }
 0x152   :  { %v256_v1 = vpop.f32.mrf.mxu1 }
 0x153   :  { %v257_v2 = vadd.f32 %v835_v35, %v256_v1 }
 0x155   :  { %v284_v3 = vmax.f32 %v257_v2, 0.0 }
 0x157   :  { %356 = vmatmul.f32.gmra.mxu2 %v284_v3 }
 0x160   :  { %v259_v4 = vpop.f32.mrf.mxu3 }
 0x161   :  { %v260_v5 = vadd.f32 %v835_v35, %v259_v4 }
 0x163   :  { %v285_v6 = vmax.f32 %v260_v5, 0.0 }
 0x165   :  { %359 = vmatmul.f32.vlgmr.msrb.gmra.mxu3 %v285_v6 }
 0x168   :  { %v262_v7 = vpop.f32.mrf.mxu3 }
 0x169   :  { %v263_v8 = vadd.f32 %v835_v35, %v262_v7 }
 0x16b   :  { %v286_v9 = vmax.f32 %v263_v8, 0.0 }
 0x16d   :  { %362 = vmatmul.f32.gmra.mxu3 %v286_v9 }
 0x170   :  { %v265_v10 = vpop.f32.mrf.mxu3 }
 0x171   :  { %v266_v11 = vadd.f32 %v835_v35, %v265_v10 }
 0x173   :  { %v287_v12 = vmax.f32 %v266_v11, 0.0 }
 0x175   :  { %365 = vmatmul.f32.gmra.mxu3 %v287_v12 }
 0x178   :  { %v268_v13 = vpop.f32.mrf.mxu3 }
 0x179   :  { %v269_v14 = vadd.f32 %v835_v35, %v268_v13 }
 0x17b   :  { %v288_v15 = vmax.f32 %v269_v14, 0.0 }
 0x17d   :  { %368 = vmatmul.f32.gmra.mxu3 %v288_v15 }
 0x180   :  { %v271_v16 = vpop.f32.mrf.mxu3 }
 0x181   :  { %v272_v17 = vadd.f32 %v835_v35, %v271_v16 }
 0x183   :  { %v289_v18 = vmax.f32 %v272_v17, 0.0 }
 0x185   :  { %371 = vmatmul.f32.gmra.mxu3 %v289_v18 }
 0x18a   :  { %v327_v20 = vpop.f32.mrf.mxu2 }
 0x18b   :  { %v328_v21 = vadd.f32 %v856_v19, %v327_v20 }
 0x18d   :  { %v375_v23 = vmax.f32 %v328_v21, 0.0 }
 0x18f   :  { %v395_v24 = vmul.f32 %v862_v22, %v375_v23 }
 0x191   :  { %411 = vadd.xlane.f32.xlu0 %v395_v24 }
 0x192   :  { %v330_v25 = vpop.f32.mrf.mxu2 }
 0x193   :  { %v331_v26 = vadd.f32 %v856_v19, %v330_v25 }
 0x195   :  { %v376_v27 = vmax.f32 %v331_v26, 0.0 }
 0x197   :  { %v396_v28 = vmul.f32 %v862_v22, %v376_v27 }
 0x199   :  { %413 = vadd.xlane.f32.xlu0 %v396_v28 }
 0x19a   :  { %v333_v29 = vpop.f32.mrf.mxu2 }
 0x19b   :  { %v334_v30 = vadd.f32 %v856_v19, %v333_v29  ;;  %v476_v29 = vlaneseq }
 0x19d   :  { %v377_v31 = vmax.f32 %v334_v30, 0.0 }
 0x19f   :  { %v397_v32 = vmul.f32 %v862_v22, %v377_v31 }
 0x1a1   :  { %415 = vadd.xlane.f32.xlu1 %v397_v32 }
 0x1a2   :  { %v336_v34 = vpop.f32.mrf.mxu2 }
 0x1a3   :  { %v337_v35 = vadd.f32 %v856_v19, %v336_v34  ;;  %v895_v34 = vand.u32 127, %v476_v29 }
 0x1a5   :  { %v378_v36 = vmax.f32 %v337_v35, 0.0  ;;  %v535_v29 = vadd.s32 4294967176, %v895_v34 }
 0x1a7   :  { %v398_v37 = vmul.f32 %v862_v22, %v378_v36 }
 0x1a9   :  { %417 = vadd.xlane.f32.xlu1 %v398_v37  ;;  %v483_v37 = vadd.s32 4294967280, %v895_v34 }
 0x1aa   :  { %v339_v38 = vpop.f32.mrf.mxu2 }
 0x1ab   :  { %v340_v39 = vadd.f32 %v856_v19, %v339_v38 }
 0x1ad   :  { %v379_v40 = vmax.f32 %v340_v39, 0.0  ;;  %v487_v39 = vadd.s32 4294967272, %v895_v34 }
 0x1af   :  { %v399_v41 = vmul.f32 %v862_v22, %v379_v40 }
 0x1b1   :  { %419 = vadd.xlane.f32.xlu2 %v399_v41 }
 0x1b2   :  { %v342_v42 = vpop.f32.mrf.mxu2 }
 0x1b3   :  { %v343_v33 = vadd.f32 %v856_v19, %v342_v42 }
 0x1b5   :  { %v380_v43 = vmax.f32 %v343_v33, 0.0 }
 0x1b7   :  { %v400_v44 = vmul.f32 %v862_v22, %v380_v43  ;;  %v491_v43 = vadd.s32 4294967264, %v895_v34 }
 0x1b9   :  { %421 = vadd.xlane.f32.xlu2 %v400_v44 }
 0x1ba   :  { %v345_v45 = vpop.f32.mrf.mxu2 }
 0x1bb   :  { %v346_v46 = vadd.f32 %v856_v19, %v345_v45 }
 0x1bd   :  { %v381_v47 = vmax.f32 %v346_v46, 0.0 }
 0x1bf   :  { %v401_v48 = vmul.f32 %v862_v22, %v381_v47 }
 0x1c1   :  { %423 = vadd.xlane.f32.xlu0 %v401_v48 }
 0x1c2   :  { %v348_v49 = vpop.f32.mrf.mxu2 }
 0x1c3   :  { %v349_v50 = vadd.f32 %v856_v19, %v348_v49  ;;  %v495_v49 = vadd.s32 4294967256, %v895_v34 }
 0x1c5   :  { %v382_v51 = vmax.f32 %v349_v50, 0.0 }
 0x1c7   :  { %v402_v52 = vmul.f32 %v862_v22, %v382_v51 }
 0x1c9   :  { %425 = vadd.xlane.f32.xlu1 %v402_v52  ;;  %v499_v52 = vadd.s32 4294967248, %v895_v34 }
 0x1ca   :  { %v351_v53 = vpop.f32.mrf.mxu2 }
 0x1cb   :  { %v352_v54 = vadd.f32 %v856_v19, %v351_v53 }
 0x1cd   :  { %v383_v55 = vmax.f32 %v352_v54, 0.0 }
 0x1cf   :  { %v403_v56 = vmul.f32 %v862_v22, %v383_v55  ;;  %v503_v55 = vadd.s32 4294967240, %v895_v34 }
 0x1d1   :  { %427 = vadd.xlane.f32.xlu2 %v403_v56 }
 0x1d2   :  { %v354_v57 = vpop.f32.mrf.mxu2 }
 0x1d3   :  { %v355_v58 = vadd.f32 %v856_v19, %v354_v57 }
 0x1d5   :  { %v384_v59 = vmax.f32 %v355_v58, 0.0  ;;  %v507_v58 = vadd.s32 4294967232, %v895_v34 }
 0x1d7   :  { %v404_v60 = vmul.f32 %v862_v22, %v384_v59 }
 0x1d9   :  { %429 = vadd.xlane.f32.xlu0 %v404_v60 }
 0x1da   :  { %v357_v61 = vpop.f32.mrf.mxu2 }
 0x1db   :  { %v358_v62 = vadd.f32 %v856_v19, %v357_v61 }
 0x1dd   :  { %v385_v63 = vmax.f32 %v358_v62, 0.0  ;;  %v511_v62 = vadd.s32 4294967224, %v895_v34 }
 0x1df   :  { %v405_v0 = vmul.f32 %v862_v22, %v385_v63 }
 0x1e1   :  { %431 = vadd.xlane.f32.xlu1 %v405_v0 }
 0x1e8   :  { %v360_v1 = vpop.f32.mrf.mxu3 }
 0x1e9   :  { %v361_v2 = vadd.f32 %v856_v19, %v360_v1 }
 0x1eb   :  { %v386_v3 = vmax.f32 %v361_v2, 0.0  ;;  %v515_v2 = vadd.s32 4294967216, %v895_v34 }
 0x1ed   :  { %v406_v4 = vmul.f32 %v862_v22, %v386_v3 }
 0x1ef   :  { %433 = vadd.xlane.f32.xlu2 %v406_v4 }
 0x1f0   :  { %v363_v5 = vpop.f32.mrf.mxu3 }
 0x1f1   :  { %v364_v6 = vadd.f32 %v856_v19, %v363_v5 }
 0x1f3   :  { %v387_v7 = vmax.f32 %v364_v6, 0.0 }
 0x1f5   :  { %v407_v8 = vmul.f32 %v862_v22, %v387_v7  ;;  %v519_v7 = vadd.s32 4294967208, %v895_v34 }
 0x1f7   :  { %435 = vadd.xlane.f32.xlu0 %v407_v8 }
 0x1f8   :  { %v366_v9 = vpop.f32.mrf.mxu3 }
 0x1f9   :  { %v367_v10 = vadd.f32 %v856_v19, %v366_v9 }
 0x1fb   :  { %v388_v11 = vmax.f32 %v367_v10, 0.0 }
 0x1fd   :  { %v408_v12 = vmul.f32 %v862_v22, %v388_v11  ;;  %v523_v11 = vadd.s32 4294967200, %v895_v34 }
 0x1ff   :  { %437 = vadd.xlane.f32.xlu1 %v408_v12 }
 0x200   :  { %v369_v13 = vpop.f32.mrf.mxu3 }
 0x201   :  { %v370_v14 = vadd.f32 %v856_v19, %v369_v13 }
 0x203   :  { %v389_v15 = vmax.f32 %v370_v14, 0.0 }
 0x204   :  { %v412_v23 = vpop.xlane.xlu0 %411 }
 0x205   :  { %v409_v16 = vmul.f32 %v862_v22, %v389_v15  ;;  %v527_v15 = vadd.s32 4294967192, %v895_v34 }
 0x207   :  { %439 = vadd.xlane.f32.xlu2 %v409_v16 }
 0x208   :  { %v372_v17 = vpop.f32.mrf.mxu3 }
 0x209   :  { %v373_v18 = vadd.f32 %v856_v19, %v372_v17  ;;  %v900_v19 = vstv %s952_s8 }
 0x20a   :  { %v444_v36 = vadd.f32 %v900_v19, %v412_v23 }
 0x20b   :  { %v390_v20 = vmax.f32 %v373_v18, 0.0 }
 0x20c   :  { %v414_v26 = vpop.xlane.xlu0 %413  ;;  %v478_v46 = vperm.slane %v444_v36, %v895_v34 }
 0x20d   :  { %v410_v21 = vmul.f32 %v862_v22, %v390_v20  ;;  %v479_v22 = vadd.s32 4294967288, %v895_v34  ;;  %v445_v35 = vadd.f32 %v900_v19, %v414_v26  ;;  %v531_v20 = vadd.s32 4294967184, %v895_v34 }
 0x20f   :  { %441 = vadd.xlane.f32.xlu0 %v410_v21  ;;  %v480_v42 = vperm.slane %v445_v35, %v479_v22 }
 0x211   :  { %v482_v51 = vsel %vm481_vm2, %v480_v42, %v478_v46 }
 0x214   :  { %v416_v24 = vpop.xlane.xlu1 %415 }
 0x215   :  { %v446_v38 = vadd.f32 %v900_v19, %v416_v24 }
 0x217   :  { %v484_v47 = vperm.slane %v446_v38, %v483_v37 }
 0x219   :  { %v486_v57 = vsel %vm485_vm3, %v484_v47, %v482_v51 }
 0x21c   :  { %v418_v27 = vpop.xlane.xlu1 %417 }
 0x21d   :  { %v447_v40 = vadd.f32 %v900_v19, %v418_v27 }
 0x21f   :  { %v488_v48 = vperm.slane %v447_v40, %v487_v39 }
 0x221   :  { %v490_v60 = vsel %vm489_vm4, %v488_v48, %v486_v57 }
 0x224   :  { %v420_v25 = vpop.xlane.xlu2 %419 }
 0x225   :  { %v448_v44 = vadd.f32 %v900_v19, %v420_v25 }
 0x227   :  { %v492_v54 = vperm.slane %v448_v44, %v491_v43 }
 0x229   :  { %v494_v5 = vsel %vm493_vm5, %v492_v54, %v490_v60 }
 0x22c   :  { %v422_v28 = vpop.xlane.xlu2 %421 }
 0x22d   :  { %v449_v50 = vadd.f32 %v900_v19, %v422_v28 }
 0x22f   :  { %v496_v61 = vperm.slane %v449_v50, %v495_v49 }
 0x231   :  { %v498_v13 = vsel %vm497_vm6, %v496_v61, %v494_v5 }
 0x234   :  { %v424_v30 = vpop.xlane.xlu0 %423 }
 0x235   :  { %v450_v53 = vadd.f32 %v900_v19, %v424_v30 }
 0x237   :  { %v500_v1 = vperm.slane %v450_v53, %v499_v52 }
 0x239   :  { %v502_v17 = vsel %vm501_vm7, %v500_v1, %v498_v13 }
 0x23c   :  { %v426_v31 = vpop.xlane.xlu1 %425 }
 0x23d   :  { %v451_v56 = vadd.f32 %v900_v19, %v426_v31 }
 0x23f   :  { %v504_v6 = vperm.slane %v451_v56, %v503_v55 }
 0x241   :  { %v506_v23 = vsel %vm505_vm8, %v504_v6, %v502_v17 }
 0x244   :  { %v428_v32 = vpop.xlane.xlu2 %427 }
 0x245   :  { %v452_v59 = vadd.f32 %v900_v19, %v428_v32 }
 0x247   :  { %v508_v10 = vperm.slane %v452_v59, %v507_v58 }
 0x249   :  { %v510_v25 = vsel %vm509_vm9, %v508_v10, %v506_v23 }
 0x24c   :  { %v430_v41 = vpop.xlane.xlu0 %429 }
 0x24d   :  { %v453_v63 = vadd.f32 %v900_v19, %v430_v41 }
 0x24f   :  { %v512_v14 = vperm.slane %v453_v63, %v511_v62 }
 0x251   :  { %v514_v27 = vsel %vm513_vm10, %v512_v14, %v510_v25 }
 0x254   :  { %v432_v33 = vpop.xlane.xlu1 %431 }
 0x255   :  { %v454_v3 = vadd.f32 %v900_v19, %v432_v33 }
 0x257   :  { %v516_v18 = vperm.slane %v454_v3, %v515_v2 }
 0x259   :  { %v518_v30 = vsel %vm517_vm11, %v516_v18, %v514_v27 }
 0x262   :  { %v434_v45 = vpop.xlane.xlu2 %433 }
 0x263   :  { %v455_v8 = vadd.f32 %v900_v19, %v434_v45 }
 0x265   :  { %v520_v24 = vperm.slane %v455_v8, %v519_v7 }
 0x267   :  { %v522_v22 = vsel %vm521_vm12, %v520_v24, %v518_v30 }
 0x26a   :  { %v436_v0 = vpop.xlane.xlu0 %435 }
 0x26b   :  { %v456_v12 = vadd.f32 %v900_v19, %v436_v0 }
 0x26d   :  { %v524_v26 = vperm.slane %v456_v12, %v523_v11 }
 0x26f   :  { %v526_v36 = vsel %vm525_vm13, %v524_v26, %v522_v22 }
 0x272   :  { %v438_v4 = vpop.xlane.xlu1 %437 }
 0x273   :  { %v457_v16 = vadd.f32 %v900_v19, %v438_v4 }
 0x275   :  { %v528_v28 = vperm.slane %v457_v16, %v527_v15 }
 0x277   :  { %v530_v37 = vsel %vm529_vm14, %v528_v28, %v526_v36 }
 0x27a   :  { %v440_v9 = vpop.xlane.xlu2 %439 }
 0x27b   :  { %v458_v21 = vadd.f32 %v900_v19, %v440_v9 }
 0x27d   :  { %v532_v31 = vperm.slane %v458_v21, %v531_v20 }
 0x27f   :  { %v534_v39 = vsel %vm533_vm15, %v532_v31, %v530_v37 }
 0x282   :  { %v442_v32 = vpop.xlane.xlu0 %441 }
 0x283   :  { %v459_v35 = vadd.f32 %v900_v19, %v442_v32 }
 0x285   :  { %v536_v38 = vperm.slane %v459_v35, %v535_v29 }
 0x287   :  { %v538_v40 = vsel %vm537_vm0, %v536_v38, %v534_v39 }
 0x288   :  { %540 = vst [vmem:[%s953_s9] sm:$0x1] %v538_v40 }

</bundles_post_ra>
